<compile_context>
chip_gen: v5e
topology: v5e:2x2
jax: 0.10.0
libtpu: 0.0.40
codegen_flags: <defaults>
</compile_context>

<pallas_src>
import functools
import math

import jax
import jax.numpy as jnp
from jax.experimental import pallas as pl
from jax.experimental.pallas import tpu as pltpu

_EPS = 1e-7
_LANE = 128
_SUB = 8

# Packed-operand layout [_NUM_ROWS, r_pad, 128]:
#   0:4  pred box   (x1, y1, x2, y2)
#   4:8  target box (x1, y1, x2, y2)
#   8    weight * fg_mask   (weight = target_scores.sum(-1))
#   9:11 anchor point (x, y)
_NUM_ROWS = 11


def _atan(x):
    """arctan via 5 exact angle-halvings + odd series (only +, *, sqrt, /)."""
    y = x
    for _ in range(5):
        y = y / (1.0 + jnp.sqrt(1.0 + y * y))
    y2 = y * y
    return 32.0 * y * (1.0 - y2 * (1.0 / 3.0 - 0.2 * y2))


def _bbox_loss_kernel(reg_max, use_dfl, tss_ref, packed_ref, *rest):
    if use_dfl:
        pd_ref, iou_out_ref, dfl_out_ref = rest
    else:
        iou_out_ref, dfl_out_ref = rest

    step = pl.program_id(0)

    @pl.when(step == 0)
    def _init():
        iou_out_ref[...] = jnp.zeros_like(iou_out_ref)
        dfl_out_ref[...] = jnp.zeros_like(dfl_out_ref)

    pk = packed_ref[...]                        # [11, tile_r, 128] — one DMA'd block
    b1_x1, b1_y1, b1_x2, b1_y2 = pk[0], pk[1], pk[2], pk[3]
    b2_x1, b2_y1, b2_x2, b2_y2 = pk[4], pk[5], pk[6], pk[7]
    wfg = pk[8]                                 # weight * fg (0 on padding / background)

    # ---------------- CIoU  (bbox_iou(..., xywh=False, CIoU=True)) ----------------
    w1 = b1_x2 - b1_x1
    h1 = b1_y2 - b1_y1 + _EPS
    w2 = b2_x2 - b2_x1
    h2 = b2_y2 - b2_y1 + _EPS

    inter = (jnp.maximum(jnp.minimum(b1_x2, b2_x2) - jnp.maximum(b1_x1, b2_x1), 0.0) *
             jnp.maximum(jnp.minimum(b1_y2, b2_y2) - jnp.maximum(b1_y1, b2_y1), 0.0))
    union = w1 * h1 + w2 * h2 - inter + _EPS
    iou = inter * pl.reciprocal(union, approx=False)

    cw = jnp.maximum(b1_x2, b2_x2) - jnp.minimum(b1_x1, b2_x1)
    ch = jnp.maximum(b1_y2, b2_y2) - jnp.minimum(b1_y1, b2_y1)
    c2 = cw * cw + ch * ch + _EPS
    dx = b2_x1 + b2_x2 - b1_x1 - b1_x2
    dy = b2_y1 + b2_y2 - b1_y1 - b1_y2
    rho2 = (dx * dx + dy * dy) * 0.25

    # atan(w2/h2) - atan(w1/h1) == arg((h1*h2 + w1*w2) + i*(w2*h1 - w1*h2)):
    # one divide + one atan instead of two; +/-pi correction only matters for
    # degenerate negative-width boxes (den < 0), keeping full-range semantics.
    num = w2 * h1 - w1 * h2
    den = h1 * h2 + w1 * w2
    datan = _atan(num * pl.reciprocal(den, approx=False))
    datan = datan + jnp.where(den < 0.0,
                              jnp.where(num >= 0.0, math.pi, -math.pi), 0.0)

    v = (4.0 / (math.pi * math.pi)) * datan * datan
    alpha = v * pl.reciprocal(v - iou + (1.0 + _EPS), approx=False)
    ciou = iou - (rho2 * pl.reciprocal(c2, approx=False) + v * alpha)

    iou_out_ref[...] += jnp.sum((1.0 - ciou) * wfg, keepdims=True)

    # ---------------- DFL (traced only when use_dfl=True) ----------------
    if use_dfl:
        bins = reg_max + 1
        pd = pd_ref[...]                        # [4*bins, tile_r, 128]
        ax, ay = pk[9], pk[10]
        # bbox2dist(anchor_points, target_bboxes, reg_max): left, top, right, bottom
        dists = (ax - b2_x1, ay - b2_y1, b2_x2 - ax, b2_y2 - ay)
        dfl = jnp.zeros_like(wfg)
        for s in range(4):                      # static unroll over the 4 sides
            base = s * bins
            tgt = jnp.clip(dists[s], 0.0, reg_max - 0.01)
            m = pd[base]
            for b in range(1, bins):
                m = jnp.maximum(m, pd[base + b])
            ssum = jnp.zeros_like(m)
            sel = jnp.zeros_like(m)
            for b in range(bins):               # static unroll over bins
                lb = pd[base + b]
                ssum = ssum + jnp.exp(lb - m)
                # triangle interp weight == wl*(b==tl) + wr*(b==tl+1), no int ops
                sel = sel + jnp.maximum(1.0 - jnp.abs(tgt - float(b)), 0.0) * lb
            dfl = dfl + (m + jnp.log(ssum) - sel)   # sum of left+right CE for side s
        dfl_out_ref[...] += jnp.sum(dfl * (0.25 * wfg), keepdims=True)

    @pl.when(step == pl.num_programs(0) - 1)
    def _finalize():
        inv_tss = 1.0 / tss_ref[0, 0]
        iou_out_ref[...] = iou_out_ref[...] * inv_tss
        dfl_out_ref[...] = dfl_out_ref[...] * inv_tss


def bbox_loss(pred_dist, pred_bboxes, anchor_points, target_bboxes,
              target_scores, target_scores_sum, fg_mask,
              reg_max, use_dfl=False, tile_rows=32):
    """Pallas TPU BboxLoss.forward. Returns (loss_iou, loss_dfl)."""
    f32 = jnp.float32
    B, A, _ = pred_bboxes.shape
    n = B * A
    bins = reg_max + 1

    fg = fg_mask.reshape(B, A).astype(f32)
    wfg = (target_scores.astype(f32).sum(-1) * fg).reshape(n)
    pb = pred_bboxes.astype(f32).reshape(n, 4)
    tb = target_bboxes.astype(f32).reshape(n, 4)
    ap = jnp.broadcast_to(anchor_points.astype(f32).reshape(-1, A, 2),
                          (B, A, 2)).reshape(n, 2)

    # Single lane-dense packed operand: features on the leading dim, anchors
    # reshaped to (sublane rows) x (128 lanes).
    packed = jnp.concatenate([pb.T, tb.T, wfg[None, :], ap.T], axis=0)   # [11, n]

    n128 = -(-n // _LANE)                                   # ceil(n / 128)
    tr = max(_SUB, min(int(tile_rows), -(-n128 // _SUB) * _SUB))
    tr = -(-tr // _SUB) * _SUB                              # multiple of 8 sublanes
    r_pad = -(-n128 // tr) * tr
    n_pad = r_pad * _LANE                                   # zero-pad => zero weight
    packed = jnp.pad(packed, ((0, 0), (0, n_pad - n)))
    packed = packed.reshape(_NUM_ROWS, r_pad, _LANE)
    grid = (r_pad // tr,)

    tss = jnp.asarray(target_scores_sum, f32).reshape(1, 1)

    inputs = [tss, packed]
    in_specs = [
        pl.BlockSpec(memory_space=pltpu.MemorySpace.SMEM),          # scalar denominator
        pl.BlockSpec((_NUM_ROWS, tr, _LANE), lambda i: (0, i, 0)),  # packed features
    ]
    if use_dfl:
        pd = pred_dist.astype(f32).reshape(n, 4 * bins).T           # [4*bins, n]
        pd = jnp.pad(pd, ((0, 0), (0, n_pad - n))).reshape(4 * bins, r_pad, _LANE)
        inputs.append(pd)
        in_specs.append(pl.BlockSpec((4 * bins, tr, _LANE), lambda i: (0, i, 0)))

    kernel = functools.partial(_bbox_loss_kernel, reg_max, use_dfl)
    loss_iou, loss_dfl = pl.pallas_call(
        kernel,
        grid=grid,
        in_specs=in_specs,
        out_specs=[pl.BlockSpec((1, 1), lambda i: (0, 0)),
                   pl.BlockSpec((1, 1), lambda i: (0, 0))],
        out_shape=[jax.ShapeDtypeStruct((1, 1), f32),
                   jax.ShapeDtypeStruct((1, 1), f32)],
        compiler_params=pltpu.CompilerParams(
            # The anchor axis carries the resident (1,1) accumulators.
            dimension_semantics=("arbitrary",)),
    )(*inputs)
    return loss_iou[0, 0], loss_dfl[0, 0]


# ----------------- pure-JAX reference (mirrors the PyTorch forward) -----------------
def _ciou_ref(box1, box2, eps=1e-7):
    b1_x1, b1_y1, b1_x2, b1_y2 = (box1[..., i] for i in range(4))
    b2_x1, b2_y1, b2_x2, b2_y2 = (box2[..., i] for i in range(4))
    w1, h1 = b1_x2 - b1_x1, b1_y2 - b1_y1 + eps
    w2, h2 = b2_x2 - b2_x1, b2_y2 - b2_y1 + eps
    inter = (jnp.maximum(jnp.minimum(b1_x2, b2_x2) - jnp.maximum(b1_x1, b2_x1), 0.0) *
             jnp.maximum(jnp.minimum(b1_y2, b2_y2) - jnp.maximum(b1_y1, b2_y1), 0.0))
    union = w1 * h1 + w2 * h2 - inter + eps
    iou = inter / union
    cw = jnp.maximum(b1_x2, b2_x2) - jnp.minimum(b1_x1, b2_x1)
    ch = jnp.maximum(b1_y2, b2_y2) - jnp.minimum(b1_y1, b2_y1)
    c2 = cw ** 2 + ch ** 2 + eps
    rho2 = ((b2_x1 + b2_x2 - b1_x1 - b1_x2) ** 2 +
            (b2_y1 + b2_y2 - b1_y1 - b1_y2) ** 2) / 4.0
    v = (4.0 / math.pi ** 2) * (jnp.arctan(w2 / h2) - jnp.arctan(w1 / h1)) ** 2
    alpha = v / (v - iou + (1.0 + eps))
    return iou - (rho2 / c2 + v * alpha)


def bbox_loss_ref(pred_dist, pred_bboxes, anchor_points, target_bboxes,
                  target_scores, target_scores_sum, fg_mask, reg_max, use_dfl):
    fg = fg_mask.astype(jnp.float32)
    weight = target_scores.sum(-1) * fg
    ciou = _ciou_ref(pred_bboxes, target_bboxes)
    loss_iou = ((1.0 - ciou) * weight).sum() / target_scores_sum
    if use_dfl:
        bins = reg_max + 1
        lt, rb = target_bboxes[..., :2], target_bboxes[..., 2:]
        ap = anchor_points[None, :, :]
        tgt = jnp.clip(jnp.concatenate([ap - lt, rb - ap], -1), 0.0, reg_max - 0.01)
        logp = jax.nn.log_softmax(pred_dist.reshape(*fg_mask.shape, 4, bins), axis=-1)
        tl = jnp.floor(tgt).astype(jnp.int32)
        tr = tl + 1
        wl = tr.astype(jnp.float32) - tgt
        wr = 1.0 - wl
        ce_l = -jnp.take_along_axis(logp, tl[..., None], axis=-1)[..., 0]
        ce_r = -jnp.take_along_axis(logp, tr[..., None], axis=-1)[..., 0]
        dfl = (ce_l * wl + ce_r * wr).mean(-1)
        loss_dfl = (dfl * weight).sum() / target_scores_sum
    else:
        loss_dfl = jnp.float32(0.0)
    return loss_iou, loss_dfl


if __name__ == "__main__":
    key = jax.random.PRNGKey(0)
    B, A_side, C, reg_max = 2, 8, 4, 15          # 2 images, 8x8 anchors, 4 classes, 16 DFL bins
    A = A_side * A_side
    bins = reg_max + 1
    ks = jax.random.split(key, 8)

    # Anchor centers of an 8x8 grid (stride-normalized units).
    xs = jnp.arange(A_side, dtype=jnp.float32) + 0.5
    xv, yv = jnp.meshgrid(xs, xs, indexing="xy")
    anchor_points = jnp.stack([xv.reshape(-1), yv.reshape(-1)], axis=-1)      # [A, 2]

    # Well-formed target / predicted boxes (xyxy) around the anchors.
    cxy = anchor_points[None] + jax.random.uniform(ks[0], (B, A, 2), minval=-0.5, maxval=0.5)
    wh = jax.random.uniform(ks[1], (B, A, 2), minval=1.0, maxval=6.0)
    target_bboxes = jnp.concatenate([cxy - wh / 2, cxy + wh / 2], axis=-1)
    p_cxy = cxy + jax.random.uniform(ks[2], (B, A, 2), minval=-1.0, maxval=1.0)
    p_wh = wh * jax.random.uniform(ks[3], (B, A, 2), minval=0.7, maxval=1.4)
    pred_bboxes = jnp.concatenate([p_cxy - p_wh / 2, p_cxy + p_wh / 2], axis=-1)

    target_scores = jax.random.uniform(ks[4], (B, A, C), dtype=jnp.float32)
    fg_mask = jax.random.uniform(ks[5], (B, A)) > 0.5
    target_scores_sum = jnp.maximum(target_scores.sum(), 1.0)
    pred_dist = jax.random.normal(ks[6], (B, A, 4 * bins), dtype=jnp.float32)

    for use_dfl in (False, True):
        li, ld = bbox_loss(pred_dist, pred_bboxes, anchor_points, target_bboxes,
                           target_scores, target_scores_sum, fg_mask,
                           reg_max=reg_max, use_dfl=use_dfl)
        li, ld = jax.block_until_ready((li, ld))
        li_r, ld_r = bbox_loss_ref(pred_dist, pred_bboxes, anchor_points, target_bboxes,
                                   target_scores, target_scores_sum, fg_mask,
                                   reg_max=reg_max, use_dfl=use_dfl)
        assert jnp.allclose(li, li_r, rtol=5e-4, atol=1e-6), (use_dfl, li, li_r)
        assert jnp.allclose(ld, ld_r, rtol=5e-4, atol=1e-6), (use_dfl, ld, ld_r)

    print("KERNEL_OK")
</pallas_src>

<mosaic_0001>
module attributes {stable_mosaic.version = 11 : i64} {
  func.func @_bbox_loss_kernel(%arg0: i32, %arg1: memref<1x1xf32, #tpu.memory_space<smem>>, %arg2: memref<11x8x128xf32, #tpu.memory_space<vmem>>, %arg3: memref<1x1xf32, #tpu.memory_space<vmem>>, %arg4: memref<1x1xf32, #tpu.memory_space<vmem>>) attributes {dimension_semantics = [#tpu.dimension_semantics<arbitrary>], iteration_bounds = array<i64: 1>, scalar_prefetch = 0 : i64, scratch_operands = 0 : i64, tpu.core_type = #tpu.core_type<tc>, window_params = [{transform_indices = @transform_0, window_bounds = array<i64: 1, 1>}, {transform_indices = @transform_1, window_bounds = array<i64: 11, 8, 128>}, {pipeline_mode = #tpu.pipeline_mode<synchronous>, transform_indices = @transform_2, window_bounds = array<i64: 1, 1>}, {pipeline_mode = #tpu.pipeline_mode<synchronous>, transform_indices = @transform_3, window_bounds = array<i64: 1, 1>}]} {
    %c0_i32 = arith.constant 0 : i32
    %0 = arith.cmpi eq, %arg0, %c0_i32 : i32
    %1 = arith.extui %0 : i1 to i32
    %c0_i32_0 = arith.constant 0 : i32
    %2 = arith.cmpi ne, %1, %c0_i32_0 : i32
    scf.if %2 {
      %cst_38 = arith.constant 0.000000e+00 : f32
      %162 = vector.broadcast %cst_38 : f32 to vector<1x1xf32>
      %c0_39 = arith.constant 0 : index
      %c0_40 = arith.constant 0 : index
      %163 = vector.load %arg3[%c0_39, %c0_40] : memref<1x1xf32, #tpu.memory_space<vmem>>, vector<1x1xf32>
      tpu.vector_store %arg3[%c0_39, %c0_40], %162 {strides = array<i32>} : memref<1x1xf32, #tpu.memory_space<vmem>>, vector<1x1xf32>,
      %cst_41 = arith.constant 0.000000e+00 : f32
      %164 = vector.broadcast %cst_41 : f32 to vector<1x1xf32>
      %c0_42 = arith.constant 0 : index
      %c0_43 = arith.constant 0 : index
      %165 = vector.load %arg4[%c0_42, %c0_43] : memref<1x1xf32, #tpu.memory_space<vmem>>, vector<1x1xf32>
      tpu.vector_store %arg4[%c0_42, %c0_43], %164 {strides = array<i32>} : memref<1x1xf32, #tpu.memory_space<vmem>>, vector<1x1xf32>,
    } else {
    }
    %c0 = arith.constant 0 : index
    %c0_1 = arith.constant 0 : index
    %c0_2 = arith.constant 0 : index
    %3 = vector.load %arg2[%c0, %c0_1, %c0_2] : memref<11x8x128xf32, #tpu.memory_space<vmem>>, vector<11x8x128xf32>
    %4 = vector.extract_strided_slice %3 {offsets = [0, 0, 0], sizes = [1, 8, 128], strides = [1, 1, 1]} : vector<11x8x128xf32> to vector<1x8x128xf32>
    %5 = vector.shape_cast %4 : vector<1x8x128xf32> to vector<8x128xf32>
    %6 = vector.extract_strided_slice %3 {offsets = [1, 0, 0], sizes = [1, 8, 128], strides = [1, 1, 1]} : vector<11x8x128xf32> to vector<1x8x128xf32>
    %7 = vector.shape_cast %6 : vector<1x8x128xf32> to vector<8x128xf32>
    %8 = vector.extract_strided_slice %3 {offsets = [2, 0, 0], sizes = [1, 8, 128], strides = [1, 1, 1]} : vector<11x8x128xf32> to vector<1x8x128xf32>
    %9 = vector.shape_cast %8 : vector<1x8x128xf32> to vector<8x128xf32>
    %10 = vector.extract_strided_slice %3 {offsets = [3, 0, 0], sizes = [1, 8, 128], strides = [1, 1, 1]} : vector<11x8x128xf32> to vector<1x8x128xf32>
    %11 = vector.shape_cast %10 : vector<1x8x128xf32> to vector<8x128xf32>
    %12 = vector.extract_strided_slice %3 {offsets = [4, 0, 0], sizes = [1, 8, 128], strides = [1, 1, 1]} : vector<11x8x128xf32> to vector<1x8x128xf32>
    %13 = vector.shape_cast %12 : vector<1x8x128xf32> to vector<8x128xf32>
    %14 = vector.extract_strided_slice %3 {offsets = [5, 0, 0], sizes = [1, 8, 128], strides = [1, 1, 1]} : vector<11x8x128xf32> to vector<1x8x128xf32>
    %15 = vector.shape_cast %14 : vector<1x8x128xf32> to vector<8x128xf32>
    %16 = vector.extract_strided_slice %3 {offsets = [6, 0, 0], sizes = [1, 8, 128], strides = [1, 1, 1]} : vector<11x8x128xf32> to vector<1x8x128xf32>
    %17 = vector.shape_cast %16 : vector<1x8x128xf32> to vector<8x128xf32>
    %18 = vector.extract_strided_slice %3 {offsets = [7, 0, 0], sizes = [1, 8, 128], strides = [1, 1, 1]} : vector<11x8x128xf32> to vector<1x8x128xf32>
    %19 = vector.shape_cast %18 : vector<1x8x128xf32> to vector<8x128xf32>
    %20 = vector.extract_strided_slice %3 {offsets = [8, 0, 0], sizes = [1, 8, 128], strides = [1, 1, 1]} : vector<11x8x128xf32> to vector<1x8x128xf32>
    %21 = vector.shape_cast %20 : vector<1x8x128xf32> to vector<8x128xf32>
    %22 = arith.subf %9, %5 : vector<8x128xf32>
    %23 = arith.subf %11, %7 : vector<8x128xf32>
    %cst = arith.constant 1.000000e-07 : f32
    %24 = vector.broadcast %cst : f32 to vector<8x128xf32>
    %25 = arith.addf %23, %24 : vector<8x128xf32>
    %26 = arith.subf %17, %13 : vector<8x128xf32>
    %27 = arith.subf %19, %15 : vector<8x128xf32>
    %cst_3 = arith.constant 1.000000e-07 : f32
    %28 = vector.broadcast %cst_3 : f32 to vector<8x128xf32>
    %29 = arith.addf %27, %28 : vector<8x128xf32>
    %30 = arith.minimumf %9, %17 : vector<8x128xf32>
    %31 = arith.maximumf %5, %13 : vector<8x128xf32>
    %32 = arith.subf %30, %31 : vector<8x128xf32>
    %cst_4 = arith.constant 0.000000e+00 : f32
    %33 = vector.broadcast %cst_4 : f32 to vector<8x128xf32>
    %34 = arith.maximumf %32, %33 : vector<8x128xf32>
    %35 = arith.minimumf %11, %19 : vector<8x128xf32>
    %36 = arith.maximumf %7, %15 : vector<8x128xf32>
    %37 = arith.subf %35, %36 : vector<8x128xf32>
    %cst_5 = arith.constant 0.000000e+00 : f32
    %38 = vector.broadcast %cst_5 : f32 to vector<8x128xf32>
    %39 = arith.maximumf %37, %38 : vector<8x128xf32>
    %40 = arith.mulf %34, %39 : vector<8x128xf32>
    %41 = arith.mulf %22, %25 : vector<8x128xf32>
    %42 = arith.mulf %26, %29 : vector<8x128xf32>
    %43 = arith.addf %41, %42 : vector<8x128xf32>
    %44 = arith.subf %43, %40 : vector<8x128xf32>
    %cst_6 = arith.constant 1.000000e-07 : f32
    %45 = vector.broadcast %cst_6 : f32 to vector<8x128xf32>
    %46 = arith.addf %44, %45 : vector<8x128xf32>
    %47 = tpu.reciprocal %46 : vector<8x128xf32> -> vector<8x128xf32>
    %48 = arith.mulf %40, %47 : vector<8x128xf32>
    %49 = arith.maximumf %9, %17 : vector<8x128xf32>
    %50 = arith.minimumf %5, %13 : vector<8x128xf32>
    %51 = arith.subf %49, %50 : vector<8x128xf32>
    %52 = arith.maximumf %11, %19 : vector<8x128xf32>
    %53 = arith.minimumf %7, %15 : vector<8x128xf32>
    %54 = arith.subf %52, %53 : vector<8x128xf32>
    %55 = arith.mulf %51, %51 : vector<8x128xf32>
    %56 = arith.mulf %54, %54 : vector<8x128xf32>
    %57 = arith.addf %55, %56 : vector<8x128xf32>
    %cst_7 = arith.constant 1.000000e-07 : f32
    %58 = vector.broadcast %cst_7 : f32 to vector<8x128xf32>
    %59 = arith.addf %57, %58 : vector<8x128xf32>
    %60 = arith.addf %13, %17 : vector<8x128xf32>
    %61 = arith.subf %60, %5 : vector<8x128xf32>
    %62 = arith.subf %61, %9 : vector<8x128xf32>
    %63 = arith.addf %15, %19 : vector<8x128xf32>
    %64 = arith.subf %63, %7 : vector<8x128xf32>
    %65 = arith.subf %64, %11 : vector<8x128xf32>
    %66 = arith.mulf %62, %62 : vector<8x128xf32>
    %67 = arith.mulf %65, %65 : vector<8x128xf32>
    %68 = arith.addf %66, %67 : vector<8x128xf32>
    %cst_8 = arith.constant 2.500000e-01 : f32
    %69 = vector.broadcast %cst_8 : f32 to vector<8x128xf32>
    %70 = arith.mulf %68, %69 : vector<8x128xf32>
    %71 = arith.mulf %26, %25 : vector<8x128xf32>
    %72 = arith.mulf %22, %29 : vector<8x128xf32>
    %73 = arith.subf %71, %72 : vector<8x128xf32>
    %74 = arith.mulf %25, %29 : vector<8x128xf32>
    %75 = arith.mulf %22, %26 : vector<8x128xf32>
    %76 = arith.addf %74, %75 : vector<8x128xf32>
    %77 = tpu.reciprocal %76 : vector<8x128xf32> -> vector<8x128xf32>
    %78 = arith.mulf %73, %77 : vector<8x128xf32>
    %79 = arith.mulf %78, %78 : vector<8x128xf32>
    %cst_9 = arith.constant 1.000000e+00 : f32
    %80 = vector.broadcast %cst_9 : f32 to vector<8x128xf32>
    %81 = arith.addf %80, %79 : vector<8x128xf32>
    %82 = math.sqrt %81 : vector<8x128xf32>
    %cst_10 = arith.constant 1.000000e+00 : f32
    %83 = vector.broadcast %cst_10 : f32 to vector<8x128xf32>
    %84 = arith.addf %83, %82 : vector<8x128xf32>
    %85 = arith.divf %78, %84 : vector<8x128xf32>
    %86 = arith.mulf %85, %85 : vector<8x128xf32>
    %cst_11 = arith.constant 1.000000e+00 : f32
    %87 = vector.broadcast %cst_11 : f32 to vector<8x128xf32>
    %88 = arith.addf %87, %86 : vector<8x128xf32>
    %89 = math.sqrt %88 : vector<8x128xf32>
    %cst_12 = arith.constant 1.000000e+00 : f32
    %90 = vector.broadcast %cst_12 : f32 to vector<8x128xf32>
    %91 = arith.addf %90, %89 : vector<8x128xf32>
    %92 = arith.divf %85, %91 : vector<8x128xf32>
    %93 = arith.mulf %92, %92 : vector<8x128xf32>
    %cst_13 = arith.constant 1.000000e+00 : f32
    %94 = vector.broadcast %cst_13 : f32 to vector<8x128xf32>
    %95 = arith.addf %94, %93 : vector<8x128xf32>
    %96 = math.sqrt %95 : vector<8x128xf32>
    %cst_14 = arith.constant 1.000000e+00 : f32
    %97 = vector.broadcast %cst_14 : f32 to vector<8x128xf32>
    %98 = arith.addf %97, %96 : vector<8x128xf32>
    %99 = arith.divf %92, %98 : vector<8x128xf32>
    %100 = arith.mulf %99, %99 : vector<8x128xf32>
    %cst_15 = arith.constant 1.000000e+00 : f32
    %101 = vector.broadcast %cst_15 : f32 to vector<8x128xf32>
    %102 = arith.addf %101, %100 : vector<8x128xf32>
    %103 = math.sqrt %102 : vector<8x128xf32>
    %cst_16 = arith.constant 1.000000e+00 : f32
    %104 = vector.broadcast %cst_16 : f32 to vector<8x128xf32>
    %105 = arith.addf %104, %103 : vector<8x128xf32>
    %106 = arith.divf %99, %105 : vector<8x128xf32>
    %107 = arith.mulf %106, %106 : vector<8x128xf32>
    %cst_17 = arith.constant 1.000000e+00 : f32
    %108 = vector.broadcast %cst_17 : f32 to vector<8x128xf32>
    %109 = arith.addf %108, %107 : vector<8x128xf32>
    %110 = math.sqrt %109 : vector<8x128xf32>
    %cst_18 = arith.constant 1.000000e+00 : f32
    %111 = vector.broadcast %cst_18 : f32 to vector<8x128xf32>
    %112 = arith.addf %111, %110 : vector<8x128xf32>
    %113 = arith.divf %106, %112 : vector<8x128xf32>
    %114 = arith.mulf %113, %113 : vector<8x128xf32>
    %cst_19 = arith.constant 3.200000e+01 : f32
    %115 = vector.broadcast %cst_19 : f32 to vector<8x128xf32>
    %116 = arith.mulf %115, %113 : vector<8x128xf32>
    %cst_20 = arith.constant 2.000000e-01 : f32
    %117 = vector.broadcast %cst_20 : f32 to vector<8x128xf32>
    %118 = arith.mulf %117, %114 : vector<8x128xf32>
    %cst_21 = arith.constant 0.333333343 : f32
    %119 = vector.broadcast %cst_21 : f32 to vector<8x128xf32>
    %120 = arith.subf %119, %118 : vector<8x128xf32>
    %121 = arith.mulf %114, %120 : vector<8x128xf32>
    %cst_22 = arith.constant 1.000000e+00 : f32
    %122 = vector.broadcast %cst_22 : f32 to vector<8x128xf32>
    %123 = arith.subf %122, %121 : vector<8x128xf32>
    %124 = arith.mulf %116, %123 : vector<8x128xf32>
    %cst_23 = arith.constant 0.000000e+00 : f32
    %125 = vector.broadcast %cst_23 : f32 to vector<8x128xf32>
    %126 = arith.cmpf olt, %76, %125 : vector<8x128xf32>
    %cst_24 = arith.constant 0.000000e+00 : f32
    %127 = vector.broadcast %cst_24 : f32 to vector<8x128xf32>
    %128 = arith.cmpf oge, %73, %127 : vector<8x128xf32>
    %cst_25 = arith.constant 3.14159274 : f32
    %cst_26 = arith.constant -3.14159274 : f32
    %129 = vector.broadcast %cst_25 : f32 to vector<8x128xf32>
    %130 = vector.broadcast %cst_26 : f32 to vector<8x128xf32>
    %131 = arith.select %128, %129, %130 : vector<8x128xi1>, vector<8x128xf32>
    %cst_27 = arith.constant 0.000000e+00 : f32
    %132 = vector.broadcast %cst_27 : f32 to vector<8x128xf32>
    %133 = arith.select %126, %131, %132 : vector<8x128xi1>, vector<8x128xf32>
    %134 = arith.addf %124, %133 : vector<8x128xf32>
    %cst_28 = arith.constant 0.405284733 : f32
    %135 = vector.broadcast %cst_28 : f32 to vector<8x128xf32>
    %136 = arith.mulf %135, %134 : vector<8x128xf32>
    %137 = arith.mulf %136, %134 : vector<8x128xf32>
    %138 = arith.subf %137, %48 : vector<8x128xf32>
    %cst_29 = arith.constant 1.00000012 : f32
    %139 = vector.broadcast %cst_29 : f32 to vector<8x128xf32>
    %140 = arith.addf %138, %139 : vector<8x128xf32>
    %141 = tpu.reciprocal %140 : vector<8x128xf32> -> vector<8x128xf32>
    %142 = arith.mulf %137, %141 : vector<8x128xf32>
    %143 = tpu.reciprocal %59 : vector<8x128xf32> -> vector<8x128xf32>
    %144 = arith.mulf %70, %143 : vector<8x128xf32>
    %145 = arith.mulf %137, %142 : vector<8x128xf32>
    %146 = arith.addf %144, %145 : vector<8x128xf32>
    %147 = arith.subf %48, %146 : vector<8x128xf32>
    %c0_30 = arith.constant 0 : index
    %c0_31 = arith.constant 0 : index
    %148 = vector.load %arg3[%c0_30, %c0_31] : memref<1x1xf32, #tpu.memory_space<vmem>>, vector<1x1xf32>
    %cst_32 = arith.constant 1.000000e+00 : f32
    %149 = vector.broadcast %cst_32 : f32 to vector<8x128xf32>
    %150 = arith.subf %149, %147 : vector<8x128xf32>
    %151 = arith.mulf %150, %21 : vector<8x128xf32>
    %152 = vector.shape_cast %151 : vector<8x128xf32> to vector<1x8x128xf32>
    %cst_33 = arith.constant dense<0.000000e+00> : vector<1xf32>
    %153 = vector.multi_reduction <add>, %152, %cst_33 [1, 2] : vector<1x8x128xf32> to vector<1xf32>
    %154 = vector.shape_cast %153 : vector<1xf32> to vector<1x1x1xf32>
    %155 = vector.extract %154[0, 0, 0] : f32 from vector<1x1x1xf32>
    %156 = vector.broadcast %155 : f32 to vector<1x1xf32>
    %157 = arith.addf %148, %156 : vector<1x1xf32>
    %c0_34 = arith.constant 0 : index
    %c0_35 = arith.constant 0 : index
    %158 = vector.load %arg3[%c0_34, %c0_35] : memref<1x1xf32, #tpu.memory_space<vmem>>, vector<1x1xf32>
    tpu.vector_store %arg3[%c0_34, %c0_35], %157 {strides = array<i32>} : memref<1x1xf32, #tpu.memory_space<vmem>>, vector<1x1xf32>,
    %c0_i32_36 = arith.constant 0 : i32
    %159 = arith.cmpi eq, %arg0, %c0_i32_36 : i32
    %160 = arith.extui %159 : i1 to i32
    %c0_i32_37 = arith.constant 0 : i32
    %161 = arith.cmpi ne, %160, %c0_i32_37 : i32
    scf.if %161 {
      %c0_38 = arith.constant 0 : index
      %c0_39 = arith.constant 0 : index
      %162 = memref.load %arg1[%c0_38, %c0_39] : memref<1x1xf32, #tpu.memory_space<smem>>
      %cst_40 = arith.constant 1.000000e+00 : f32
      %163 = arith.divf %cst_40, %162 : f32
      %c0_41 = arith.constant 0 : index
      %c0_42 = arith.constant 0 : index
      %164 = vector.load %arg3[%c0_41, %c0_42] : memref<1x1xf32, #tpu.memory_space<vmem>>, vector<1x1xf32>
      %165 = vector.broadcast %163 : f32 to vector<1x1xf32>
      %166 = arith.mulf %164, %165 : vector<1x1xf32>
      %c0_43 = arith.constant 0 : index
      %c0_44 = arith.constant 0 : index
      %167 = vector.load %arg3[%c0_43, %c0_44] : memref<1x1xf32, #tpu.memory_space<vmem>>, vector<1x1xf32>
      tpu.vector_store %arg3[%c0_43, %c0_44], %166 {strides = array<i32>} : memref<1x1xf32, #tpu.memory_space<vmem>>, vector<1x1xf32>,
      %c0_45 = arith.constant 0 : index
      %c0_46 = arith.constant 0 : index
      %168 = vector.load %arg4[%c0_45, %c0_46] : memref<1x1xf32, #tpu.memory_space<vmem>>, vector<1x1xf32>
      %169 = vector.broadcast %163 : f32 to vector<1x1xf32>
      %170 = arith.mulf %168, %169 : vector<1x1xf32>
      %c0_47 = arith.constant 0 : index
      %c0_48 = arith.constant 0 : index
      %171 = vector.load %arg4[%c0_47, %c0_48] : memref<1x1xf32, #tpu.memory_space<vmem>>, vector<1x1xf32>
      tpu.vector_store %arg4[%c0_47, %c0_48], %170 {strides = array<i32>} : memref<1x1xf32, #tpu.memory_space<vmem>>, vector<1x1xf32>,
    } else {
    }
    return
  }
  func.func @transform_0(%arg0: i32) -> (i32, i32) {
    %c0_i32 = arith.constant 0 : i32
    %c0_i32_0 = arith.constant 0 : i32
    %c0_i32_1 = arith.constant 0 : i32
    return %c0_i32, %c0_i32_0 : i32, i32
  }
  func.func @transform_1(%arg0: i32) -> (i32, i32, i32) {
    %c0_i32 = arith.constant 0 : i32
    %c0_i32_0 = arith.constant 0 : i32
    %c0_i32_1 = arith.constant 0 : i32
    return %c0_i32, %arg0, %c0_i32_0 : i32, i32, i32
  }
  func.func @transform_2(%arg0: i32) -> (i32, i32) {
    %c0_i32 = arith.constant 0 : i32
    %c0_i32_0 = arith.constant 0 : i32
    %c0_i32_1 = arith.constant 0 : i32
    return %c0_i32, %c0_i32_0 : i32, i32
  }
  func.func @transform_3(%arg0: i32) -> (i32, i32) {
    %c0_i32 = arith.constant 0 : i32
    %c0_i32_0 = arith.constant 0 : i32
    %c0_i32_1 = arith.constant 0 : i32
    return %c0_i32, %c0_i32_0 : i32, i32
  }
}

</mosaic_0001>

<bundles_post_ra>
// kernel: tpu_custom_call.1
= control target key start
LH: loop header
LB: loop body
LE: loop exit
PB: predicated region body
PF: predicated region fallthrough
CT: control target
= control target key end

     0   :  { %10 = vsyncpa [#allocation4], 0  ;;  %s586_s0 = inlined_call_operand.<no memory space> [shape: f32[1,1], index: 0, kind: input, shape index: {}]   ;;  %s587_s1 = inlined_call_operand.hbm [shape: f32[11,8,128], index: 1, kind: input, shape index: {}]   ;;  %s588_s2 = inlined_call_operand.hbm [shape: f32[1,1], index: 2, kind: output, shape index: {0}]   ;;  %s589_s3 = inlined_call_operand.hbm [shape: f32[1,1], index: 3, kind: output, shape index: {1}]  }
   0x1   :  { %11 = vsyncpa [#allocation5], 0 }
   0x2   :  { %12 = vsyncpa [#allocation8], 0  ;;  %s19_s14 = sshll.u32 %s587_s1, 4  ;;  %s518_s15 = smov [#allocation3]   ;;  %s20_s14 = int_to_ptr.hbm [resolvable:$true] %s19_s14 }
   0x3   :  { %s21_s16 = sshll.u32 %s518_s15, 4  ;;  %s519_s17 = smov 128   ;;  %s22_s16 = int_to_ptr.vmem [resolvable:$true] %s21_s16 }
   0x4   :  { %s520_s18 = smov 8  }
   0x5   :  { %27 = dma.hbm_to_vmem [thread:$0]  %s20_s14, 1408, %s22_s16, [#allocation4], %s519_s17, %s519_s17, %s520_s18  }
   0x6   :  { %512 = dma.done.wait [#allocation4], 1408  }
   0x7   :  { %513 = vsyncadd [#allocation4], 4294965888  ;;  %v39_v0 = vld [vmem:[#allocation3] sm:$0xff]  ;;  %v40_v1 = vld [vmem:[#allocation3 + $0x8] sm:$0xff]  ;;  %s384_s24 = sshll.u32 %s589_s3, 4  ;;  %s524_s26 = smov [#allocation6]   ;;  %s385_s24 = int_to_ptr.hbm [resolvable:$true] %s384_s24 }
   0x8   :  { %v41_v2 = vld [vmem:[#allocation3 + $0x10] sm:$0xff]  ;;  %v42_v3 = vld [vmem:[#allocation3 + $0x18] sm:$0xff]  ;;  %v43_v4 = vld [vmem:[#allocation3 + $0x20] sm:$0xff]  ;;  %s371_s27 = sshll.u32 %s524_s26, 4  ;;  %s373_s30 = sshll.u32 %s588_s2, 4  ;;  %s372_s27 = int_to_ptr.vmem [resolvable:$true] %s371_s27  ;;  %s374_s30 = int_to_ptr.hbm [resolvable:$true] %s373_s30 }
   0x9   :  { %v44_v5 = vld [vmem:[#allocation3 + $0x28] sm:$0xff]  ;;  %v48_v6 = vsub.f32 %v41_v2, %v39_v0  ;;  %v45_v7 = vld [vmem:[#allocation3 + $0x30] sm:$0xff]  ;;  %v46_v8 = vld [vmem:[#allocation3 + $0x38] sm:$0xff]  ;;  %v49_v9 = vsub.f32 %v42_v3, %v40_v1  ;;  %v55_v10 = vmax.f32 %v39_v0, %v43_v4  ;;  %v84_v12 = vmin.f32 %v39_v0, %v43_v4 }
   0xa   :  { %v59_v11 = vmax.f32 %v40_v1, %v44_v5  ;;  %v51_v13 = vsub.f32 %v45_v7, %v43_v4  ;;  %v52_v14 = vsub.f32 %v46_v8, %v44_v5  ;;  %v54_v15 = vmin.f32 %v41_v2, %v45_v7 }
   0xb   :  { %v58_v16 = vmin.f32 %v42_v3, %v46_v8  ;;  %v50_v17 = vadd.f32 1e-07, %v49_v9  ;;  %v83_v18 = vmax.f32 %v41_v2, %v45_v7  ;;  %v86_v19 = vmax.f32 %v42_v3, %v46_v8 }
   0xc   :  { %v87_v20 = vmin.f32 %v40_v1, %v44_v5  ;;  %v53_v21 = vadd.f32 1e-07, %v52_v14  ;;  %v56_v22 = vsub.f32 %v54_v15, %v55_v10  ;;  %v93_v24 = vadd.f32 %v45_v7, %v43_v4 }
   0xd   :  { %v60_v23 = vsub.f32 %v58_v16, %v59_v11  ;;  %v63_v25 = vmul.f32 %v50_v17, %v48_v6  ;;  %v85_v26 = vsub.f32 %v83_v18, %v84_v12  ;;  %v96_v28 = vadd.f32 %v46_v8, %v44_v5 }
   0xe   :  { %v88_v27 = vsub.f32 %v86_v19, %v87_v20  ;;  %v57_v29 = vmax.f32 %v56_v22, 0.0  ;;  %v64_v31 = vmul.f32 %v53_v21, %v51_v13  ;;  %v94_v32 = vsub.f32 %v93_v24, %v39_v0 }
   0xf   :  { %v61_v30 = vmax.f32 %v60_v23, 0.0  ;;  %v89_v33 = vmul.f32 %v85_v26, %v85_v26  ;;  %v97_v35 = vsub.f32 %v96_v28, %v40_v1  ;;  %v106_v41 = vmul.f32 %v53_v21, %v50_v17 }
  0x10   :  { %v90_v34 = vmul.f32 %v88_v27, %v88_v27  ;;  %v65_v37 = vadd.f32 %v64_v31, %v63_v25  ;;  %v95_v38 = vsub.f32 %v94_v32, %v41_v2  ;;  %v107_v42 = vmul.f32 %v51_v13, %v48_v6 }
  0x11   :  { %v62_v36 = vmul.f32 %v61_v30, %v57_v29  ;;  %v98_v40 = vsub.f32 %v97_v35, %v42_v3  ;;  %v103_v51 = vmul.f32 %v51_v13, %v50_v17  ;;  %v104_v54 = vmul.f32 %v53_v21, %v48_v6 }
  0x12   :  { %v548_v39 = vadd.f32 %v90_v34, %v89_v33  ;;  %v99_v44 = vmul.f32 %v95_v38, %v95_v38  ;;  %v550_v46 = vadd.f32 %v107_v42, %v106_v41 }
  0x13   :  { %v66_v43 = vsub.f32 %v65_v37, %v62_v36  ;;  %v100_v45 = vmul.f32 %v98_v40, %v98_v40  ;;  %v559_v1 = vsub.f32 %v103_v51, %v104_v54 }
  0x14   :  { %410 = vrcp.f32 %v550_v46  ;;  %vm114_vm0 = vweird.f32 %v550_v46  ;;  %v120_v55 = vand.u32 2147483648, %v550_v46  ;;  %v118_v58 = vand.u32 2147483647, %v550_v46 }
  0x15   :  { %v67_v47 = vadd.f32 1e-07, %v66_v43  ;;  %v552_v48 = vadd.f32 %v100_v45, %v99_v44 }
  0x16   :  { %v121_v63 = vor.u32 1.1754944e-38, %v120_v55  ;;  %vm119_vm6 = vcmp.eq.f32.partialorder %v118_v58, 8.507059e+37 }
  0x17   :  { %412 = vrcp.f32 %v67_v47  ;;  %v79_v56 = vand.u32 2147483648, %v67_v47  ;;  %vm73_vm2 = vweird.f32 %v67_v47  ;;  %v77_v60 = vand.u32 2147483647, %v67_v47 }
  0x19   :  { %v80_v0 = vor.u32 1.1754944e-38, %v79_v56  ;;  %vm78_vm7 = vcmp.eq.f32.partialorder %v77_v60, 8.507059e+37 }
  0x1a   :  { %v411_v49 = vpop.eup %410 }
  0x1b   :  { %v110_v52 = vmul.f32 %v411_v49, %v550_v46  ;;  %vm115_vm1 = vweird.f32 %v411_v49 }
  0x1c   :  { %vm116_vm4 = vmor %vm114_vm0, %vm115_vm1 }
  0x1d   :  { %v413_v50 = vpop.eup %412  ;;  %v111_v57 = vsub.f32 1.0, %v110_v52 }
  0x1e   :  { %v69_v53 = vmul.f32 %v413_v50, %v67_v47  ;;  %vm74_vm3 = vweird.f32 %v413_v50 }
  0x1f   :  { %v112_v61 = vmul.f32 %v411_v49, %v111_v57  ;;  %vm75_vm5 = vmor %vm73_vm2, %vm74_vm3 }
  0x20   :  { %v70_v59 = vsub.f32 1.0, %v69_v53 }
  0x21   :  { %v113_v2 = vadd.f32 %v411_v49, %v112_v61 }
  0x22   :  { %v71_v62 = vmul.f32 %v413_v50, %v70_v59 }
  0x23   :  { %v117_v4 = vsel %vm116_vm4, %v411_v49, %v113_v2 }
  0x24   :  { %v72_v3 = vadd.f32 %v413_v50, %v71_v62  ;;  %v122_v6 = vsel %vm119_vm6, %v121_v63, %v117_v4 }
  0x25   :  { %v123_v8 = vmul.f32 %v122_v6, %v559_v1 }
  0x26   :  { %v76_v5 = vsel %vm75_vm5, %v413_v50, %v72_v3 }
  0x27   :  { %v81_v7 = vsel %vm78_vm7, %v80_v0, %v76_v5  ;;  %v124_v10 = vmul.f32 %v123_v8, %v123_v8 }
  0x28   :  { %v562_v9 = vmul.f32 %v81_v7, %v62_v36 }
  0x29   :  { %v125_v11 = vadd.f32 1.0, %v124_v10 }
  0x2b   :  { %414 = vrsqrt.f32 %v125_v11  ;;  %vm133_vm8 = vcmp.eq.f32.partialorder %v125_v11, inf  ;;  %v136_v18 = vand.u32 2147483648, %v125_v11  ;;  %vm135_vm9 = vcmp.eq.f32.partialorder %v125_v11, 0.0 }
  0x31   :  { %v415_v12 = vpop.eup %414 }
  0x32   :  { %v127_v13 = vmul.f32 %v415_v12, %v125_v11 }
  0x34   :  { %v128_v14 = vmul.f32 %v415_v12, %v127_v13 }
  0x36   :  { %v129_v15 = vmul.f32 0.5, %v128_v14 }
  0x38   :  { %v130_v16 = vsub.f32 1.5, %v129_v15 }
  0x3a   :  { %v131_v17 = vmul.f32 %v415_v12, %v130_v16 }
  0x3c   :  { %v132_v19 = vmul.f32 %v131_v17, %v125_v11 }
  0x3e   :  { %v134_v20 = vsel %vm133_vm8, %v125_v11, %v132_v19 }
  0x3f   :  { %v137_v21 = vsel %vm135_vm9, %v136_v18, %v134_v20 }
  0x40   :  { %v138_v22 = vadd.f32 1.0, %v137_v21 }
  0x42   :  { %416 = vrcp.f32 %v138_v22  ;;  %v150_v25 = vand.u32 2147483648, %v138_v22  ;;  %vm144_vm10 = vweird.f32 %v138_v22  ;;  %v148_v27 = vand.u32 2147483647, %v138_v22 }
  0x44   :  { %v151_v29 = vor.u32 1.1754944e-38, %v150_v25  ;;  %vm149_vm13 = vcmp.eq.f32.partialorder %v148_v27, 8.507059e+37 }
  0x48   :  { %v417_v23 = vpop.eup %416 }
  0x49   :  { %v140_v24 = vmul.f32 %v417_v23, %v138_v22  ;;  %vm145_vm11 = vweird.f32 %v417_v23 }
  0x4a   :  { %vm146_vm12 = vmor %vm144_vm10, %vm145_vm11 }
  0x4b   :  { %v141_v26 = vsub.f32 1.0, %v140_v24 }
  0x4d   :  { %v142_v28 = vmul.f32 %v417_v23, %v141_v26 }
  0x4f   :  { %v143_v30 = vadd.f32 %v417_v23, %v142_v28 }
  0x51   :  { %v147_v31 = vsel %vm146_vm12, %v417_v23, %v143_v30 }
  0x52   :  { %v152_v32 = vsel %vm149_vm13, %v151_v29, %v147_v31 }
  0x53   :  { %v153_v33 = vmul.f32 %v152_v32, %v123_v8 }
  0x55   :  { %v154_v34 = vmul.f32 %v153_v33, %v153_v33 }
  0x57   :  { %v155_v35 = vadd.f32 1.0, %v154_v34 }
  0x59   :  { %418 = vrsqrt.f32 %v155_v35  ;;  %vm163_vm14 = vcmp.eq.f32.partialorder %v155_v35, inf  ;;  %v166_v43 = vand.u32 2147483648, %v155_v35  ;;  %vm165_vm15 = vcmp.eq.f32.partialorder %v155_v35, 0.0 }
  0x5f   :  { %v419_v36 = vpop.eup %418 }
  0x60   :  { %v157_v37 = vmul.f32 %v419_v36, %v155_v35 }
  0x62   :  { %v158_v38 = vmul.f32 %v419_v36, %v157_v37 }
  0x64   :  { %v159_v40 = vmul.f32 0.5, %v158_v38 }
  0x66   :  { %v160_v41 = vsub.f32 1.5, %v159_v40 }
  0x68   :  { %v161_v42 = vmul.f32 %v419_v36, %v160_v41 }
  0x6a   :  { %v162_v44 = vmul.f32 %v161_v42, %v155_v35 }
  0x6c   :  { %v164_v45 = vsel %vm163_vm14, %v155_v35, %v162_v44 }
  0x6d   :  { %v167_v47 = vsel %vm165_vm15, %v166_v43, %v164_v45 }
  0x6e   :  { %v168_v49 = vadd.f32 1.0, %v167_v47 }
  0x70   :  { %420 = vrcp.f32 %v168_v49  ;;  %v180_v52 = vand.u32 2147483648, %v168_v49  ;;  %vm174_vm0 = vweird.f32 %v168_v49  ;;  %v178_v54 = vand.u32 2147483647, %v168_v49 }
  0x72   :  { %v181_v56 = vor.u32 1.1754944e-38, %v180_v52  ;;  %vm179_vm3 = vcmp.eq.f32.partialorder %v178_v54, 8.507059e+37 }
  0x76   :  { %v421_v50 = vpop.eup %420 }
  0x77   :  { %v170_v51 = vmul.f32 %v421_v50, %v168_v49  ;;  %vm175_vm1 = vweird.f32 %v421_v50 }
  0x78   :  { %vm176_vm2 = vmor %vm174_vm0, %vm175_vm1 }
  0x79   :  { %v171_v53 = vsub.f32 1.0, %v170_v51 }
  0x7b   :  { %v172_v55 = vmul.f32 %v421_v50, %v171_v53 }
  0x7d   :  { %v173_v57 = vadd.f32 %v421_v50, %v172_v55 }
  0x7f   :  { %v177_v58 = vsel %vm176_vm2, %v421_v50, %v173_v57 }
  0x80   :  { %v182_v59 = vsel %vm179_vm3, %v181_v56, %v177_v58 }
  0x81   :  { %v183_v60 = vmul.f32 %v182_v59, %v153_v33 }
  0x83   :  { %v184_v61 = vmul.f32 %v183_v60, %v183_v60 }
  0x85   :  { %v185_v62 = vadd.f32 1.0, %v184_v61 }
  0x87   :  { %422 = vrsqrt.f32 %v185_v62  ;;  %vm193_vm4 = vcmp.eq.f32.partialorder %v185_v62, inf  ;;  %v196_v6 = vand.u32 2147483648, %v185_v62  ;;  %vm195_vm5 = vcmp.eq.f32.partialorder %v185_v62, 0.0 }
  0x8d   :  { %v423_v63 = vpop.eup %422 }
  0x8e   :  { %v187_v0 = vmul.f32 %v423_v63, %v185_v62 }
  0x90   :  { %v188_v2 = vmul.f32 %v423_v63, %v187_v0  ;;  %v92_v0 = vadd.f32 1e-07, %v548_v39 }
  0x92   :  { %v189_v3 = vmul.f32 0.5, %v188_v2 }
  0x94   :  { %v190_v4 = vsub.f32 1.5, %v189_v3 }
  0x96   :  { %v191_v5 = vmul.f32 %v423_v63, %v190_v4 }
  0x98   :  { %v192_v7 = vmul.f32 %v191_v5, %v185_v62 }
  0x9a   :  { %v194_v8 = vsel %vm193_vm4, %v185_v62, %v192_v7 }
  0x9b   :  { %v197_v10 = vsel %vm195_vm5, %v196_v6, %v194_v8 }
  0x9c   :  { %v198_v11 = vadd.f32 1.0, %v197_v10 }
  0x9e   :  { %424 = vrcp.f32 %v198_v11  ;;  %v210_v14 = vand.u32 2147483648, %v198_v11  ;;  %vm204_vm6 = vweird.f32 %v198_v11  ;;  %v208_v16 = vand.u32 2147483647, %v198_v11 }
  0xa0   :  { %v211_v18 = vor.u32 1.1754944e-38, %v210_v14  ;;  %vm209_vm9 = vcmp.eq.f32.partialorder %v208_v16, 8.507059e+37 }
  0xa4   :  { %v425_v12 = vpop.eup %424 }
  0xa5   :  { %v200_v13 = vmul.f32 %v425_v12, %v198_v11  ;;  %vm205_vm7 = vweird.f32 %v425_v12 }
  0xa6   :  { %vm206_vm8 = vmor %vm204_vm6, %vm205_vm7  ;;  %vm282_vm6 = vcmp.ge.f32.partialorder %v559_v1, 0.0  ;;  %vm281_vm7 = vcmp.lt.f32.partialorder %v550_v46, 0.0 }
  0xa7   :  { %v201_v15 = vsub.f32 1.0, %v200_v13 }
  0xa9   :  { %v202_v17 = vmul.f32 %v425_v12, %v201_v15 }
  0xab   :  { %v203_v19 = vadd.f32 %v425_v12, %v202_v17 }
  0xad   :  { %v207_v20 = vsel %vm206_vm8, %v425_v12, %v203_v19  ;;  %vm310_vm8 = vweird.f32 %v92_v0 }
  0xae   :  { %v212_v21 = vsel %vm209_vm9, %v211_v18, %v207_v20  ;;  %v102_v18 = vmul.f32 0.25, %v552_v48  ;;  %v316_v20 = vand.u32 2147483648, %v92_v0 }
  0xaf   :  { %v213_v22 = vmul.f32 %v212_v21, %v183_v60 }
  0xb1   :  { %v214_v23 = vmul.f32 %v213_v22, %v213_v22 }
  0xb3   :  { %v215_v24 = vadd.f32 1.0, %v214_v23 }
  0xb5   :  { %426 = vrsqrt.f32 %v215_v24  ;;  %vm223_vm10 = vcmp.eq.f32.partialorder %v215_v24, inf  ;;  %v226_v31 = vand.u32 2147483648, %v215_v24  ;;  %vm225_vm11 = vcmp.eq.f32.partialorder %v215_v24, 0.0 }
  0xbb   :  { %v427_v25 = vpop.eup %426 }
  0xbc   :  { %v217_v26 = vmul.f32 %v427_v25, %v215_v24 }
  0xbe   :  { %v218_v27 = vmul.f32 %v427_v25, %v217_v26 }
  0xc0   :  { %v219_v28 = vmul.f32 0.5, %v218_v27  ;;  %v317_v27 = vor.u32 1.1754944e-38, %v316_v20 }
  0xc2   :  { %v220_v29 = vsub.f32 1.5, %v219_v28 }
  0xc4   :  { %v221_v30 = vmul.f32 %v427_v25, %v220_v29  ;;  %v521_v25 = vmov -3.1415927  }
  0xc5   :  { %v283_v26 = vsel %vm282_vm6, 3.1415927, %v521_v25 }
  0xc6   :  { %v222_v32 = vmul.f32 %v221_v30, %v215_v24  ;;  %v284_v48 = vsel %vm281_vm7, %v283_v26, 0.0 }
  0xc8   :  { %v224_v33 = vsel %vm223_vm10, %v215_v24, %v222_v32 }
  0xc9   :  { %v227_v34 = vsel %vm225_vm11, %v226_v31, %v224_v33 }
  0xca   :  { %v228_v35 = vadd.f32 1.0, %v227_v34 }
  0xcc   :  { %428 = vrcp.f32 %v228_v35  ;;  %v240_v38 = vand.u32 2147483648, %v228_v35  ;;  %vm234_vm12 = vweird.f32 %v228_v35  ;;  %v238_v41 = vand.u32 2147483647, %v228_v35 }
  0xce   :  { %v241_v43 = vor.u32 1.1754944e-38, %v240_v38  ;;  %vm239_vm15 = vcmp.eq.f32.partialorder %v238_v41, 8.507059e+37 }
  0xd2   :  { %v429_v36 = vpop.eup %428 }
  0xd3   :  { %v230_v37 = vmul.f32 %v429_v36, %v228_v35  ;;  %vm235_vm13 = vweird.f32 %v429_v36 }
  0xd4   :  { %vm236_vm14 = vmor %vm234_vm12, %vm235_vm13 }
  0xd5   :  { %v231_v40 = vsub.f32 1.0, %v230_v37 }
  0xd7   :  { %v232_v42 = vmul.f32 %v429_v36, %v231_v40 }
  0xd9   :  { %v233_v44 = vadd.f32 %v429_v36, %v232_v42 }
  0xdb   :  { %v237_v45 = vsel %vm236_vm14, %v429_v36, %v233_v44 }
  0xdc   :  { %v242_v47 = vsel %vm239_vm15, %v241_v43, %v237_v45 }
  0xdd   :  { %v243_v49 = vmul.f32 %v242_v47, %v213_v22  ;;  %v314_v22 = vand.u32 2147483647, %v92_v0 }
  0xdf   :  { %v244_v50 = vmul.f32 %v243_v49, %v243_v49  ;;  %vm315_vm11 = vcmp.eq.f32.partialorder %v314_v22, 8.507059e+37 }
  0xe1   :  { %v245_v51 = vadd.f32 1.0, %v244_v50 }
  0xe3   :  { %430 = vrsqrt.f32 %v245_v51  ;;  %vm253_vm0 = vcmp.eq.f32.partialorder %v245_v51, inf  ;;  %v256_v58 = vand.u32 2147483648, %v245_v51  ;;  %vm255_vm1 = vcmp.eq.f32.partialorder %v245_v51, 0.0 }
  0xe9   :  { %v431_v52 = vpop.eup %430 }
  0xea   :  { %v247_v53 = vmul.f32 %v431_v52, %v245_v51 }
  0xec   :  { %v248_v54 = vmul.f32 %v431_v52, %v247_v53  ;;  %v47_v53 = vld [vmem:[#allocation3 + $0x40] sm:$0xff] }
  0xee   :  { %v249_v55 = vmul.f32 0.5, %v248_v54 }
  0xf0   :  { %v250_v56 = vsub.f32 1.5, %v249_v55 }
  0xf2   :  { %v251_v57 = vmul.f32 %v431_v52, %v250_v56  ;;  %v343_v56 = vstv %s586_s0  ;;  %s523_s0 = smov [#allocation7]  }
  0xf3   :  { %s382_s20 = sshll.u32 %s523_s0, 4  ;;  %s383_s20 = int_to_ptr.vmem [resolvable:$true] %s382_s20 }
  0xf4   :  { %v252_v59 = vmul.f32 %v251_v57, %v245_v51  ;;  %v522_v57 = vmov 0.0  }
  0xf6   :  { %v254_v60 = vsel %vm253_vm0, %v245_v51, %v252_v59  ;;  %vm36_vm0 = vcmask 0  }
  0xf7   :  { %v257_v61 = vsel %vm255_vm1, %v256_v58, %v254_v60  ;;  %37 = vst.msk [vmem:[#allocation6] sm:$0x1] %vm36_vm0, %v522_v57  ;;  %vm349_vm1 = vweird.f32 %v343_v56 }
  0xf8   :  { %v258_v62 = vadd.f32 1.0, %v257_v61  ;;  %38 = vst.msk [vmem:[#allocation7] sm:$0x1] %vm36_vm0, %v522_v57 }
  0xfa   :  { %432 = vrcp.f32 %v258_v62  ;;  %v270_v3 = vand.u32 2147483648, %v258_v62  ;;  %vm264_vm2 = vweird.f32 %v258_v62  ;;  %v268_v5 = vand.u32 2147483647, %v258_v62 }
  0xfb   :  { %434 = vrcp.f32 %v92_v0 }
  0xfc   :  { %v271_v7 = vor.u32 1.1754944e-38, %v270_v3  ;;  %vm269_vm5 = vcmp.eq.f32.partialorder %v268_v5, 8.507059e+37  ;;  %v353_v3 = vand.u32 2147483647, %v343_v56 }
 0x100   :  { %v433_v63 = vpop.eup %432 }
 0x101   :  { %v260_v2 = vmul.f32 %v433_v63, %v258_v62  ;;  %vm265_vm3 = vweird.f32 %v433_v63  ;;  %v435_v12 = vpop.eup %434 }
 0x102   :  { %vm266_vm4 = vmor %vm264_vm2, %vm265_vm3  ;;  %v306_v14 = vmul.f32 %v435_v12, %v92_v0  ;;  %vm311_vm9 = vweird.f32 %v435_v12  ;;  %v355_v0 = vand.u32 2147483648, %v343_v56 }
 0x103   :  { %v261_v4 = vsub.f32 1.0, %v260_v2  ;;  %vm312_vm10 = vmor %vm310_vm8, %vm311_vm9 }
 0x104   :  { %v307_v16 = vsub.f32 1.0, %v306_v14 }
 0x105   :  { %v262_v6 = vmul.f32 %v433_v63, %v261_v4 }
 0x106   :  { %v308_v17 = vmul.f32 %v435_v12, %v307_v16 }
 0x107   :  { %v263_v8 = vadd.f32 %v433_v63, %v262_v6  ;;  %v356_v6 = vor.u32 1.1754944e-38, %v355_v0 }
 0x108   :  { %v309_v21 = vadd.f32 %v435_v12, %v308_v17 }
 0x109   :  { %v267_v10 = vsel %vm266_vm4, %v433_v63, %v263_v8  ;;  %vm354_vm4 = vcmp.eq.f32.partialorder %v353_v3, 8.507059e+37 }
 0x10a   :  { %v272_v11 = vsel %vm269_vm5, %v271_v7, %v267_v10  ;;  %v313_v28 = vsel %vm312_vm10, %v435_v12, %v309_v21  ;;  %v323_v12 = vld [vmem:[#allocation6] sm:$0x1] }
 0x10b   :  { %v273_v13 = vmul.f32 %v272_v11, %v243_v49  ;;  %v318_v29 = vsel %vm315_vm11, %v317_v27, %v313_v28 }
 0x10c   :  { %v319_v30 = vmul.f32 %v318_v29, %v102_v18 }
 0x10d   :  { %v274_v15 = vmul.f32 %v273_v13, %v273_v13  ;;  %v275_v23 = vmul.f32 32.0, %v273_v13  ;;  %v363_v13 = vld [vmem:[#allocation7] sm:$0x1] }
 0x10f   :  { %v276_v39 = vmul.f32 0.2, %v274_v15 }
 0x111   :  { %v277_v19 = vsub.f32 0.33333334, %v276_v39 }
 0x113   :  { %v278_v24 = vmul.f32 %v277_v19, %v274_v15 }
 0x115   :  { %v279_v1 = vsub.f32 1.0, %v278_v24 }
 0x117   :  { %v280_v31 = vmul.f32 %v279_v1, %v275_v23 }
 0x119   :  { %v285_v32 = vadd.f32 %v284_v48, %v280_v31 }
 0x11b   :  { %v286_v33 = vmul.f32 0.40528473, %v285_v32 }
 0x11d   :  { %v287_v34 = vmul.f32 %v286_v33, %v285_v32 }
 0x11f   :  { %v288_v35 = vsub.f32 %v287_v34, %v562_v9 }
 0x121   :  { %v289_v36 = vadd.f32 1.0000001, %v288_v35 }
 0x123   :  { %436 = vrcp.f32 %v289_v36  ;;  %v301_v40 = vand.u32 2147483648, %v289_v36  ;;  %vm295_vm12 = vweird.f32 %v289_v36  ;;  %v299_v42 = vand.u32 2147483647, %v289_v36 }
 0x124   :  { %438 = vrcp.f32 %v343_v56 }
 0x125   :  { %v302_v46 = vor.u32 1.1754944e-38, %v301_v40  ;;  %vm300_vm15 = vcmp.eq.f32.partialorder %v299_v42, 8.507059e+37 }
 0x129   :  { %v437_v37 = vpop.eup %436 }
 0x12a   :  { %v291_v38 = vmul.f32 %v437_v37, %v289_v36  ;;  %vm296_vm13 = vweird.f32 %v437_v37  ;;  %v439_v58 = vpop.eup %438 }
 0x12b   :  { %vm297_vm14 = vmor %vm295_vm12, %vm296_vm13  ;;  %v345_v59 = vmul.f32 %v439_v58, %v343_v56  ;;  %vm350_vm2 = vweird.f32 %v439_v58 }
 0x12c   :  { %v292_v41 = vsub.f32 1.0, %v291_v38  ;;  %vm351_vm3 = vmor %vm349_vm1, %vm350_vm2 }
 0x12d   :  { %v346_v60 = vsub.f32 1.0, %v345_v59 }
 0x12e   :  { %v293_v43 = vmul.f32 %v437_v37, %v292_v41 }
 0x130   :  { %v294_v44 = vadd.f32 %v437_v37, %v293_v43 }
 0x132   :  { %v298_v45 = vsel %vm297_vm14, %v437_v37, %v294_v44 }
 0x133   :  { %v303_v47 = vsel %vm300_vm15, %v302_v46, %v298_v45 }
 0x134   :  { %v304_v49 = vmul.f32 %v303_v47, %v287_v34 }
 0x136   :  { %v320_v50 = vmul.f32 %v304_v49, %v287_v34 }
 0x138   :  { %v321_v51 = vadd.f32 %v320_v50, %v319_v30 }
 0x13a   :  { %v322_v52 = vsub.f32 %v562_v9, %v321_v51  ;;  %v347_v9 = vmul.f32 %v439_v58, %v346_v60 }
 0x13c   :  { %v324_v54 = vsub.f32 1.0, %v322_v52  ;;  %v348_v2 = vadd.f32 %v439_v58, %v347_v9 }
 0x13e   :  { %v325_v55 = vmul.f32 %v324_v54, %v47_v53  ;;  %v352_v7 = vsel %vm351_vm3, %v439_v58, %v348_v2 }
 0x13f   :  { %v357_v11 = vsel %vm354_vm4, %v356_v6, %v352_v7 }
 0x140   :  { %326 = vadd.xlane.f32.xlu0 %v325_v55 }
 0x1b3   :  { %v327_v61 = vpop.xlane.xlu0 %326 }
 0x1b4   :  { %v328_v62 = vrot.slane %v327_v61, 4 }
 0x1b6   :  { %v329_v63 = vadd.f32 %v328_v62, %v327_v61 }
 0x1b8   :  { %v330_v4 = vrot.slane %v329_v63, 2 }
 0x1ba   :  { %v331_v5 = vadd.f32 %v330_v4, %v329_v63 }
 0x1bc   :  { %v332_v8 = vrot.slane %v331_v5, 1 }
 0x1be   :  { %v333_v10 = vadd.f32 %v332_v8, %v331_v5 }
 0x1c0   :  { %399 = vpush %v333_v10 }
 0x1c1   :  { %401 = vpush %v357_v11 }
 0x1f1   :  { %s400_s21 = spop %399 }
 0x1f2   :  { %v335_v14 = vstv %s400_s21  ;;  %s402_s25 = spop %401 }
 0x1f3   :  { %v336_v15 = vadd.f32 %v335_v14, %v323_v12  ;;  %v360_v16 = vstv %s402_s25 }
 0x1f4   :  { %v364_v39 = vmul.f32 %v363_v13, %v360_v16 }
 0x1f5   :  { %338 = vst.msk [vmem:[#allocation6] sm:$0x1] %vm36_vm0, %v336_v15 }
 0x1f6   :  { %365 = vst.msk [vmem:[#allocation7] sm:$0x1] %vm36_vm0, %v364_v39 }
 0x1f7   :  { %387 = dma.vmem_to_hbm [thread:$0]  %s383_s20, 16, %s385_s24, [#allocation8]  }
 0x1fc   :  { %v359_v17 = vld [vmem:[#allocation6] sm:$0x1] }
 0x1fd   :  { %v361_v18 = vmul.f32 %v360_v16, %v359_v17 }
 0x1ff   :  { %362 = vst.msk [vmem:[#allocation6] sm:$0x1] %vm36_vm0, %v361_v18 }
 0x200   :  { %376 = dma.vmem_to_hbm [thread:$0]  %s372_s27, 16, %s374_s30, [#allocation5]  }
 0x201   :  { %514 = dma.done.wait [#allocation5], 16  }
 0x202   :  { %515 = vsyncadd [#allocation5], 4294967280 }
 0x203   :  { %516 = dma.done.wait [#allocation8], 16  }
 0x204   :  { %517 = vsyncadd [#allocation8], 4294967280 }
 0x205   :  { %396 = vsyncpa [#allocation4], 1 }
 0x206   :  { %397 = vsyncpa [#allocation5], 1 }
 0x207   :  { %398 = vsyncpa [#allocation8], 1 }

</bundles_post_ra>
